<compile_context>
chip_gen: v7x
topology: tpu7x:2x2x1
jax: 0.10.0
libtpu: 0.0.40
codegen_flags: <defaults>
</compile_context>

<pallas_src>
import jax
import jax.numpy as jnp
from jax.experimental import pallas as pl
from jax.experimental.pallas import tpu as pltpu


# ---------------------------------------------------------------------------
# Production forward: DummyEncoder.forward(x) == x  ->  free identity.
# ---------------------------------------------------------------------------
def dummy_encoder_forward(x):
    """Identity forward of DummyEncoder — zero HBM traffic, no kernel launch."""
    return x


# ---------------------------------------------------------------------------
# Explicit copy, path 1 (default): one direct HBM -> HBM DMA.
# ---------------------------------------------------------------------------
def _hbm_copy_kernel(x_hbm_ref, o_hbm_ref, sem):
    # Single whole-array DMA; no VMEM staging, no vreg pass.
    copy = pltpu.make_async_copy(x_hbm_ref, o_hbm_ref, sem)
    copy.start()
    copy.wait()


def dummy_encoder_pallas_copy(x):
    """Materialize a copy of `x` with a single HBM->HBM DMA."""
    nbytes = x.size * x.dtype.itemsize
    return pl.pallas_call(
        _hbm_copy_kernel,
        out_shape=jax.ShapeDtypeStruct(x.shape, x.dtype),
        in_specs=[pl.BlockSpec(memory_space=pl.ANY)],
        out_specs=pl.BlockSpec(memory_space=pl.ANY),
        scratch_shapes=[pltpu.SemaphoreType.DMA],
        cost_estimate=pl.CostEstimate(
            flops=0, transcendentals=0, bytes_accessed=2 * nbytes),
    )(x)


# ---------------------------------------------------------------------------
# Explicit copy, path 2 (optional): BlockSpec-pipelined VMEM copy.
# ---------------------------------------------------------------------------
def _vmem_copy_kernel(x_ref, o_ref):
    o_ref[...] = x_ref[...]


_LANE_CHOICES = (4096, 2048, 1024, 512, 256, 128)


def _pick_lane_width(total):
    """Largest lane width (multiple of 128) that divides the flattened size."""
    for lane in _LANE_CHOICES:
        if total % lane == 0:
            return lane
    return None


def dummy_encoder_pallas_copy_pipelined(x, *, target_block_bytes=4 * 1024 * 1024):
    """Tiled, lane-dense, pipelined VMEM copy (for callers that want VMEM staging)."""
    orig_shape = x.shape
    total = x.size
    itemsize = x.dtype.itemsize

    lane = _pick_lane_width(total)
    if lane is None:
        # Awkward element count: no lane-dense factorization.  Do NOT build a
        # single whole-array VMEM block (VMEM-OOM risk, wasted sublanes) —
        # fall back to the direct HBM->HBM DMA copy, which is faster anyway.
        return dummy_encoder_pallas_copy(x)

    rows = total // lane
    x2d = x.reshape(rows, lane)

    row_bytes = lane * itemsize
    # ~4 MiB blocks, rows rounded to a multiple of 32 so bf16 (16,128) and
    # int8/fp8 (32,128) sublane packing stay legal without relayout stores.
    tile_rows = max(32, (target_block_bytes // row_bytes // 32) * 32)
    if tile_rows >= rows:
        tile_rows = rows  # single full-extent block along rows (always legal)
    else:
        # Prefer an even number of grid steps: balanced 2-TC sharding on v7x
        # (no-op on single-TC v5e / v6e).
        nblk = -(-rows // tile_rows)
        if nblk > 1 and nblk % 2 == 1:
            alt = ((-(-rows // (nblk + 1)) + 31) // 32) * 32
            if 32 <= alt < tile_rows and (-(-rows // alt)) % 2 == 0:
                tile_rows = alt

    grid = (pl.cdiv(rows, tile_rows),)
    block_bytes = tile_rows * row_bytes
    # Input triple-buffered + output double-buffered + headroom; capped well
    # under v7x's 64 MiB physical VMEM.
    vmem_budget = min(5 * block_bytes + (4 << 20), 48 << 20)

    out2d = pl.pallas_call(
        _vmem_copy_kernel,
        out_shape=jax.ShapeDtypeStruct((rows, lane), x.dtype),
        grid=grid,
        in_specs=[pl.BlockSpec((tile_rows, lane), lambda i: (i, 0),
                               pipeline_mode=pl.Buffered(3))],
        out_specs=pl.BlockSpec((tile_rows, lane), lambda i: (i, 0)),
        compiler_params=pltpu.CompilerParams(
            dimension_semantics=("parallel",),
            vmem_limit_bytes=vmem_budget,
        ),
        cost_estimate=pl.CostEstimate(
            flops=0, transcendentals=0, bytes_accessed=2 * total * itemsize),
    )(x2d)

    return out2d.reshape(orig_shape)


# ---------------------------------------------------------------------------
# Module mirror.
# ---------------------------------------------------------------------------
class DummyEncoderPallas:
    """Mirror of the PyTorch DummyEncoder (no parameters to initialize)."""

    def __init__(self, opts):
        self.input_channels = opts["input_channels"]
        self.num_features = None

    def __call__(self, x):
        return dummy_encoder_forward(x)

    def get_feature_num(self, image_size=None):
        if self.num_features is None:
            assert image_size is not None, "Image size must be given in the first time"
            self.num_features = (
                image_size["height"] * image_size["width"] * self.input_channels
            )
        return self.num_features

    # TODO(synk): save/load in the PyTorch module are trivial file I/O stubs;
    # omitted here (script must not read/write files).


if __name__ == "__main__":
    key = jax.random.PRNGKey(0)
    # batch=2, channels=4, spatial=16x16 — NCHW, consistent with conv encoders.
    x = jax.random.normal(key, (2, 4, 16, 16), dtype=jnp.float32)

    enc = DummyEncoderPallas({"input_channels": 4})

    # 1) Production forward: identity, zero HBM traffic.
    y = jax.block_until_ready(enc(x))
    assert y.shape == x.shape and y.dtype == x.dtype
    assert bool(jnp.all(y == x))

    # 2) Explicit copy via a single HBM->HBM DMA (default copy path).
    y_dma = jax.block_until_ready(dummy_encoder_pallas_copy(x))
    assert y_dma.shape == x.shape and y_dma.dtype == x.dtype
    assert bool(jnp.all(y_dma == x))

    # 3) Pipelined VMEM copy exercised on a larger tensor:
    #    8 MiB -> lane=4096, 256-row (4 MiB) blocks, even grid of 2 "parallel" steps.
    x_big = jax.random.normal(jax.random.PRNGKey(1), (8, 4, 256, 256), jnp.float32)
    y_big = jax.block_until_ready(dummy_encoder_pallas_copy_pipelined(x_big))
    assert y_big.shape == x_big.shape and y_big.dtype == x_big.dtype
    assert bool(jnp.all(y_big == x_big))

    # 4) Larger tensor through the DMA path too.
    y_big_dma = jax.block_until_ready(dummy_encoder_pallas_copy(x_big))
    assert bool(jnp.all(y_big_dma == x_big))

    # 5) Awkward element count: pipelined path falls back to the DMA copy
    #    instead of a single whole-array VMEM block.
    x_odd = jax.random.normal(jax.random.PRNGKey(2), (1, 3, 7, 5), jnp.float32)
    y_odd = jax.block_until_ready(dummy_encoder_pallas_copy_pipelined(x_odd))
    assert y_odd.shape == x_odd.shape and bool(jnp.all(y_odd == x_odd))

    assert enc.get_feature_num({"height": 16, "width": 16}) == 16 * 16 * 4

    print("KERNEL_OK")
</pallas_src>

<mosaic_0001>
module attributes {stable_mosaic.version = 11 : i64} {
  func.func @_hbm_copy_kernel(%arg0: memref<2x4x16x16xf32, #tpu.memory_space<any>>, %arg1: memref<2x4x16x16xf32, #tpu.memory_space<any>>, %arg2: memref<!tpu.dma_semaphore, #tpu.memory_space<semaphore_mem>>) attributes {dimension_semantics = [], scalar_prefetch = 0 : i64, scratch_operands = 1 : i64, tpu.core_type = #tpu.core_type<tc>} {
    tpu.enqueue_dma source(%arg0 : memref<2x4x16x16xf32, #tpu.memory_space<any>>) target(%arg1 : memref<2x4x16x16xf32, #tpu.memory_space<any>>) target_semaphore(%arg2 : memref<!tpu.dma_semaphore, #tpu.memory_space<semaphore_mem>>)
    tpu.wait_dma2 semaphore(%arg2 : memref<!tpu.dma_semaphore, #tpu.memory_space<semaphore_mem>>) src(%arg0 : memref<2x4x16x16xf32, #tpu.memory_space<any>>) dst(%arg1 : memref<2x4x16x16xf32, #tpu.memory_space<any>>)
    return
  }
}

</mosaic_0001>

<bundles_post_ra>
// kernel: tpu_custom_call.1
= control target key start
LH: loop header
LB: loop body
LE: loop exit
PB: predicated region body
PF: predicated region fallthrough
CT: control target
= control target key end

     0   :  { %s36_s6 = smov [#allocation2]   ;;  %s37_s7 = smov [#allocation3]   ;;  %s55_s0 = inlined_call_operand.hbm [shape: f32[2,4,16,16], index: 0, kind: input, shape index: {}]   ;;  %s56_s1 = inlined_call_operand.hbm [shape: f32[2,4,16,16], index: 1, kind: output, shape index: {}]  }
   0x1   :  { %s38_s8 = smov 0  }
   0x2   :  { %18 = dma.general %s55_s0, 2048, %s56_s1, %s36_s6, %s37_s7, [#allocation4], %s38_s8, 0  }
   0x3   :  { %34 = dma.done.wait [#allocation2], 2048 }
   0x4   :  { %35 = vsyncadd [#allocation2], 4294965248 }
   0x5   :  { %24 = vsyncmov [#allocation2] }
   0x8   :  { %s25_s13 = vpop.sfrf %24 }
   0x9   :  { %p30_p0 = scmp.ne.s32.totalorder %s25_s13, 0 }
   0xb   :  { %29 = shalt.err (%p30_p0)  }

</bundles_post_ra>
